<compile_context>
chip_gen: v7x
topology: tpu7x:2x2x1
jax: 0.10.0
libtpu: 0.0.40
codegen_flags: <defaults>
</compile_context>

<pallas_src>
import functools

import jax
import jax.numpy as jnp
from jax import lax
from jax.experimental import pallas as pl
from jax.experimental.pallas import tpu as pltpu


def _encoder_kernel(w_ref, x_ref, o_ref, buf_ref, *, H, W, NB, levels, max_dil):
    """Fused causal-conv stack for one batch chunk.

    w_ref  : SMEM f32[levels*7]  per level: [w00,w01,w02,w10,w11,w12,bias]
    x_ref  : VMEM (NB, H, W)     input chunk
    o_ref  : VMEM (NB, H, W)     output chunk
    buf_ref: VMEM (H+max_dil, NB*(W+2)) lane-packed zero-padded activation
    """
    slab = W + 2
    NW = NB * slab          # packed lane width
    WA = NW - 2             # accumulator width (packed cols 1 .. NW-2)

    # ---- pack: zero the pad regions (causal top rows + per-slab halos),
    #      then drop each batch element into its slab interior. ------------
    buf_ref[...] = jnp.zeros_like(buf_ref)
    for i in range(NB):
        c0 = i * slab + 1
        buf_ref[max_dil:max_dil + H, c0:c0 + W] = x_ref[i]

    # Interior-column mask over the accumulator (acc column a <-> packed
    # column a+1).  Hoisted: constant across all levels.
    m = (lax.broadcasted_iota(jnp.int32, (H, WA), 1) + 1) % slab
    interior = jnp.logical_and(m >= 1, m <= W)

    # ---- level loop: activation never leaves VMEM -------------------------
    for level in range(levels):
        d = 2 ** level
        base = level * 7
        xp = buf_ref[...]                                    # (H+max_dil, NW)
        acc = jnp.full((H, WA), w_ref[base + 6], jnp.float32)   # bias splat
        for kh in range(2):
            r0 = max_dil - d + kh * d                        # causal row offset
            xr = xp[r0:r0 + H, :]                            # shared across kw
            for kw in range(3):
                acc = acc + w_ref[base + kh * 3 + kw] * xr[:, kw:kw + WA]
        # ReLU; re-zero the halo columns so next level's +-1 taps stay clean.
        buf_ref[max_dil:max_dil + H, 1:1 + WA] = jnp.where(
            interior, jnp.maximum(acc, 0.0), 0.0)

    # ---- unpack ------------------------------------------------------------
    for i in range(NB):
        c0 = i * slab + 1
        o_ref[i] = buf_ref[max_dil:max_dil + H, c0:c0 + W]


def encoder_forward(x_nchw, params):
    """Pallas implementation of Encoder.forward.  x_nchw: (N, 1, H, W)."""
    N, C, H, W = x_nchw.shape
    assert C == 1, "CausalConv2d has in_channels=1"
    levels = len(params)
    max_dil = 2 ** (levels - 1)

    x = x_nchw[:, 0, :, :].astype(jnp.float32)               # (N, H, W)
    wflat = jnp.concatenate(
        [jnp.concatenate([w.reshape(-1), b.reshape(-1)]) for w, b in params]
    ).astype(jnp.float32)                                     # f32[levels*7]

    # Batch-chunk size: pack several batch elements into the lane axis
    # (target ~256 packed lanes when the batch allows it).
    slab = W + 2
    NB = max(1, min(N, (256 + slab - 1) // slab))
    grid = (pl.cdiv(N, NB),)

    kernel = functools.partial(
        _encoder_kernel, H=H, W=W, NB=NB, levels=levels, max_dil=max_dil)

    out = pl.pallas_call(
        kernel,
        out_shape=jax.ShapeDtypeStruct((N, H, W), jnp.float32),
        grid=grid,
        in_specs=[
            pl.BlockSpec(memory_space=pltpu.SMEM),             # conv weights
            pl.BlockSpec((NB, H, W), lambda b: (b, 0, 0)),
        ],
        out_specs=pl.BlockSpec((NB, H, W), lambda b: (b, 0, 0)),
        scratch_shapes=[pltpu.VMEM((H + max_dil, NB * slab), jnp.float32)],
        compiler_params=pltpu.CompilerParams(
            dimension_semantics=("parallel",)),                # megacore on v7x
    )(wflat, x)
    return out[:, None, :, :]                                  # back to NCHW


def init_encoder_params(key, levels):
    """Deterministic conv params: weight (1,1,2,3), bias (1,) per level."""
    params = []
    for _ in range(levels):
        key, kw, kb = jax.random.split(key, 3)
        fan_in = 1 * 2 * 3
        bound = 1.0 / (fan_in ** 0.5)
        w = jax.random.uniform(kw, (1, 1, 2, 3), jnp.float32, -bound, bound)
        b = jax.random.uniform(kb, (1,), jnp.float32, -bound, bound)
        params.append((w, b))
    return params


def encoder_reference(x_nchw, params):
    """Pure-JAX (lax.conv) reference mirroring the PyTorch forward."""
    y = x_nchw.astype(jnp.float32)
    for level, (w, b) in enumerate(params):
        dilation = 2 ** level
        y = lax.conv_general_dilated(
            y, w,
            window_strides=(1, 1),
            padding=((dilation, dilation), (1, 1)),
            rhs_dilation=(dilation, 1),
            dimension_numbers=("NCHW", "OIHW", "NCHW"))
        y = y + b.reshape(1, -1, 1, 1)
        y = jnp.maximum(y, 0.0)
        y = y[:, :, :-dilation, :]
    return y


if __name__ == "__main__":
    levels = 2
    key = jax.random.PRNGKey(0)
    key, kx = jax.random.split(key)
    x = jax.random.normal(kx, (2, 1, 16, 16), jnp.float32)  # NCHW, C=1

    params = init_encoder_params(jax.random.PRNGKey(0), levels)

    out = encoder_forward(x, params)
    out = jax.block_until_ready(out)

    ref = encoder_reference(x, params)
    assert out.shape == ref.shape == x.shape
    assert jnp.allclose(out, ref, atol=1e-5, rtol=1e-5)

    print("KERNEL_OK")
</pallas_src>

<mosaic_0001>
module attributes {stable_mosaic.version = 11 : i64} {
  func.func @_encoder_kernel(%arg0: i32, %arg1: memref<14xf32, #tpu.memory_space<smem>>, %arg2: memref<2x16x16xf32, #tpu.memory_space<vmem>>, %arg3: memref<2x16x16xf32, #tpu.memory_space<vmem>>, %arg4: memref<18x36xf32, #tpu.memory_space<vmem>>) attributes {dimension_semantics = [#tpu.dimension_semantics<parallel>], iteration_bounds = array<i64: 1>, scalar_prefetch = 0 : i64, scratch_operands = 1 : i64, tpu.core_type = #tpu.core_type<tc>, window_params = [{transform_indices = @transform_0, window_bounds = array<i64: 14>}, {transform_indices = @transform_1, window_bounds = array<i64: 2, 16, 16>}, {transform_indices = @transform_2, window_bounds = array<i64: 2, 16, 16>}]} {
    %cst = arith.constant 0.000000e+00 : f32
    %0 = vector.broadcast %cst : f32 to vector<18x36xf32>
    %c0 = arith.constant 0 : index
    %c0_0 = arith.constant 0 : index
    %1 = vector.load %arg4[%c0, %c0_0] : memref<18x36xf32, #tpu.memory_space<vmem>>, vector<18x36xf32>
    tpu.vector_store %arg4[%c0, %c0_0], %0 {strides = array<i32>} : memref<18x36xf32, #tpu.memory_space<vmem>>, vector<18x36xf32>,
    %c0_1 = arith.constant 0 : index
    %c0_2 = arith.constant 0 : index
    %c0_3 = arith.constant 0 : index
    %2 = vector.load %arg2[%c0_1, %c0_2, %c0_3] : memref<2x16x16xf32, #tpu.memory_space<vmem>>, vector<1x16x16xf32>
    %3 = vector.shape_cast %2 : vector<1x16x16xf32> to vector<16x16xf32>
    %c2 = arith.constant 2 : index
    %c1 = arith.constant 1 : index
    %4 = vector.load %arg4[%c2, %c1] : memref<18x36xf32, #tpu.memory_space<vmem>>, vector<16x16xf32>
    tpu.vector_store %arg4[%c2, %c1], %3 {strides = array<i32>} : memref<18x36xf32, #tpu.memory_space<vmem>>, vector<16x16xf32>,
    %c1_4 = arith.constant 1 : index
    %c0_5 = arith.constant 0 : index
    %c0_6 = arith.constant 0 : index
    %5 = vector.load %arg2[%c1_4, %c0_5, %c0_6] : memref<2x16x16xf32, #tpu.memory_space<vmem>>, vector<1x16x16xf32>
    %6 = vector.shape_cast %5 : vector<1x16x16xf32> to vector<16x16xf32>
    %c2_7 = arith.constant 2 : index
    %c19 = arith.constant 19 : index
    %7 = vector.load %arg4[%c2_7, %c19] : memref<18x36xf32, #tpu.memory_space<vmem>>, vector<16x16xf32>
    tpu.vector_store %arg4[%c2_7, %c19], %6 {strides = array<i32>} : memref<18x36xf32, #tpu.memory_space<vmem>>, vector<16x16xf32>,
    %8 = tpu.iota {dimensions = array<i32: 1>} : vector<16x34xi32>
    %c1_i32 = arith.constant 1 : i32
    %9 = vector.broadcast %c1_i32 : i32 to vector<16x34xi32>
    %10 = arith.addi %8, %9 : vector<16x34xi32>
    %c18_i32 = arith.constant 18 : i32
    %c0_i32 = arith.constant 0 : i32
    %11 = arith.cmpi eq, %c18_i32, %c0_i32 : i32
    %c1_i32_8 = arith.constant 1 : i32
    %12 = arith.select %11, %c1_i32_8, %c18_i32 : i32
    %13 = vector.broadcast %12 : i32 to vector<16x34xi32>
    %14 = arith.remsi %10, %13 : vector<16x34xi32>
    %c0_i32_9 = arith.constant 0 : i32
    %15 = vector.broadcast %c0_i32_9 : i32 to vector<16x34xi32>
    %16 = arith.cmpi ne, %14, %15 : vector<16x34xi32>
    %c0_i32_10 = arith.constant 0 : i32
    %17 = vector.broadcast %c0_i32_10 : i32 to vector<16x34xi32>
    %18 = arith.cmpi slt, %14, %17 : vector<16x34xi32>
    %c0_i32_11 = arith.constant 0 : i32
    %19 = arith.cmpi slt, %12, %c0_i32_11 : i32
    %20 = vector.broadcast %19 : i1 to vector<16x34xi1>
    %21 = vector.broadcast %20 : vector<16x34xi1> to vector<16x34xi1>
    %22 = arith.xori %18, %21 : vector<16x34xi1>
    %23 = arith.andi %22, %16 : vector<16x34xi1>
    %24 = vector.broadcast %12 : i32 to vector<16x34xi32>
    %25 = arith.addi %14, %24 : vector<16x34xi32>
    %26 = arith.select %23, %25, %14 : vector<16x34xi1>, vector<16x34xi32>
    %c1_i32_12 = arith.constant 1 : i32
    %27 = vector.broadcast %c1_i32_12 : i32 to vector<16x34xi32>
    %28 = arith.cmpi sge, %26, %27 : vector<16x34xi32>
    %c16_i32 = arith.constant 16 : i32
    %29 = vector.broadcast %c16_i32 : i32 to vector<16x34xi32>
    %30 = arith.cmpi sle, %26, %29 : vector<16x34xi32>
    %31 = arith.andi %28, %30 : vector<16x34xi1>
    %c0_13 = arith.constant 0 : index
    %c0_14 = arith.constant 0 : index
    %32 = vector.load %arg4[%c0_13, %c0_14] : memref<18x36xf32, #tpu.memory_space<vmem>>, vector<18x36xf32>
    %c6 = arith.constant 6 : index
    %33 = memref.load %arg1[%c6] : memref<14xf32, #tpu.memory_space<smem>>
    %34 = vector.broadcast %33 : f32 to vector<16x34xf32>
    %35 = vector.extract_strided_slice %32 {offsets = [1, 0], sizes = [16, 36], strides = [1, 1]} : vector<18x36xf32> to vector<16x36xf32>
    %c0_15 = arith.constant 0 : index
    %36 = memref.load %arg1[%c0_15] : memref<14xf32, #tpu.memory_space<smem>>
    %37 = vector.extract_strided_slice %35 {offsets = [0, 0], sizes = [16, 34], strides = [1, 1]} : vector<16x36xf32> to vector<16x34xf32>
    %38 = vector.broadcast %36 : f32 to vector<16x34xf32>
    %39 = arith.mulf %38, %37 : vector<16x34xf32>
    %40 = arith.addf %34, %39 : vector<16x34xf32>
    %c1_16 = arith.constant 1 : index
    %41 = memref.load %arg1[%c1_16] : memref<14xf32, #tpu.memory_space<smem>>
    %42 = vector.extract_strided_slice %35 {offsets = [0, 1], sizes = [16, 34], strides = [1, 1]} : vector<16x36xf32> to vector<16x34xf32>
    %43 = vector.broadcast %41 : f32 to vector<16x34xf32>
    %44 = arith.mulf %43, %42 : vector<16x34xf32>
    %45 = arith.addf %40, %44 : vector<16x34xf32>
    %c2_17 = arith.constant 2 : index
    %46 = memref.load %arg1[%c2_17] : memref<14xf32, #tpu.memory_space<smem>>
    %47 = vector.extract_strided_slice %35 {offsets = [0, 2], sizes = [16, 34], strides = [1, 1]} : vector<16x36xf32> to vector<16x34xf32>
    %48 = vector.broadcast %46 : f32 to vector<16x34xf32>
    %49 = arith.mulf %48, %47 : vector<16x34xf32>
    %50 = arith.addf %45, %49 : vector<16x34xf32>
    %51 = vector.extract_strided_slice %32 {offsets = [2, 0], sizes = [16, 36], strides = [1, 1]} : vector<18x36xf32> to vector<16x36xf32>
    %c3 = arith.constant 3 : index
    %52 = memref.load %arg1[%c3] : memref<14xf32, #tpu.memory_space<smem>>
    %53 = vector.extract_strided_slice %51 {offsets = [0, 0], sizes = [16, 34], strides = [1, 1]} : vector<16x36xf32> to vector<16x34xf32>
    %54 = vector.broadcast %52 : f32 to vector<16x34xf32>
    %55 = arith.mulf %54, %53 : vector<16x34xf32>
    %56 = arith.addf %50, %55 : vector<16x34xf32>
    %c4 = arith.constant 4 : index
    %57 = memref.load %arg1[%c4] : memref<14xf32, #tpu.memory_space<smem>>
    %58 = vector.extract_strided_slice %51 {offsets = [0, 1], sizes = [16, 34], strides = [1, 1]} : vector<16x36xf32> to vector<16x34xf32>
    %59 = vector.broadcast %57 : f32 to vector<16x34xf32>
    %60 = arith.mulf %59, %58 : vector<16x34xf32>
    %61 = arith.addf %56, %60 : vector<16x34xf32>
    %c5 = arith.constant 5 : index
    %62 = memref.load %arg1[%c5] : memref<14xf32, #tpu.memory_space<smem>>
    %63 = vector.extract_strided_slice %51 {offsets = [0, 2], sizes = [16, 34], strides = [1, 1]} : vector<16x36xf32> to vector<16x34xf32>
    %64 = vector.broadcast %62 : f32 to vector<16x34xf32>
    %65 = arith.mulf %64, %63 : vector<16x34xf32>
    %66 = arith.addf %61, %65 : vector<16x34xf32>
    %cst_18 = arith.constant 0.000000e+00 : f32
    %67 = vector.broadcast %cst_18 : f32 to vector<16x34xf32>
    %68 = arith.maximumf %66, %67 : vector<16x34xf32>
    %cst_19 = arith.constant 0.000000e+00 : f32
    %69 = vector.broadcast %cst_19 : f32 to vector<16x34xf32>
    %70 = arith.select %31, %68, %69 : vector<16x34xi1>, vector<16x34xf32>
    %c2_20 = arith.constant 2 : index
    %c1_21 = arith.constant 1 : index
    %71 = vector.load %arg4[%c2_20, %c1_21] : memref<18x36xf32, #tpu.memory_space<vmem>>, vector<16x34xf32>
    tpu.vector_store %arg4[%c2_20, %c1_21], %70 {strides = array<i32>} : memref<18x36xf32, #tpu.memory_space<vmem>>, vector<16x34xf32>,
    %c0_22 = arith.constant 0 : index
    %c0_23 = arith.constant 0 : index
    %72 = vector.load %arg4[%c0_22, %c0_23] : memref<18x36xf32, #tpu.memory_space<vmem>>, vector<18x36xf32>
    %c13 = arith.constant 13 : index
    %73 = memref.load %arg1[%c13] : memref<14xf32, #tpu.memory_space<smem>>
    %74 = vector.broadcast %73 : f32 to vector<16x34xf32>
    %75 = vector.extract_strided_slice %72 {offsets = [0, 0], sizes = [16, 36], strides = [1, 1]} : vector<18x36xf32> to vector<16x36xf32>
    %c7 = arith.constant 7 : index
    %76 = memref.load %arg1[%c7] : memref<14xf32, #tpu.memory_space<smem>>
    %77 = vector.extract_strided_slice %75 {offsets = [0, 0], sizes = [16, 34], strides = [1, 1]} : vector<16x36xf32> to vector<16x34xf32>
    %78 = vector.broadcast %76 : f32 to vector<16x34xf32>
    %79 = arith.mulf %78, %77 : vector<16x34xf32>
    %80 = arith.addf %74, %79 : vector<16x34xf32>
    %c8 = arith.constant 8 : index
    %81 = memref.load %arg1[%c8] : memref<14xf32, #tpu.memory_space<smem>>
    %82 = vector.extract_strided_slice %75 {offsets = [0, 1], sizes = [16, 34], strides = [1, 1]} : vector<16x36xf32> to vector<16x34xf32>
    %83 = vector.broadcast %81 : f32 to vector<16x34xf32>
    %84 = arith.mulf %83, %82 : vector<16x34xf32>
    %85 = arith.addf %80, %84 : vector<16x34xf32>
    %c9 = arith.constant 9 : index
    %86 = memref.load %arg1[%c9] : memref<14xf32, #tpu.memory_space<smem>>
    %87 = vector.extract_strided_slice %75 {offsets = [0, 2], sizes = [16, 34], strides = [1, 1]} : vector<16x36xf32> to vector<16x34xf32>
    %88 = vector.broadcast %86 : f32 to vector<16x34xf32>
    %89 = arith.mulf %88, %87 : vector<16x34xf32>
    %90 = arith.addf %85, %89 : vector<16x34xf32>
    %91 = vector.extract_strided_slice %72 {offsets = [2, 0], sizes = [16, 36], strides = [1, 1]} : vector<18x36xf32> to vector<16x36xf32>
    %c10 = arith.constant 10 : index
    %92 = memref.load %arg1[%c10] : memref<14xf32, #tpu.memory_space<smem>>
    %93 = vector.extract_strided_slice %91 {offsets = [0, 0], sizes = [16, 34], strides = [1, 1]} : vector<16x36xf32> to vector<16x34xf32>
    %94 = vector.broadcast %92 : f32 to vector<16x34xf32>
    %95 = arith.mulf %94, %93 : vector<16x34xf32>
    %96 = arith.addf %90, %95 : vector<16x34xf32>
    %c11 = arith.constant 11 : index
    %97 = memref.load %arg1[%c11] : memref<14xf32, #tpu.memory_space<smem>>
    %98 = vector.extract_strided_slice %91 {offsets = [0, 1], sizes = [16, 34], strides = [1, 1]} : vector<16x36xf32> to vector<16x34xf32>
    %99 = vector.broadcast %97 : f32 to vector<16x34xf32>
    %100 = arith.mulf %99, %98 : vector<16x34xf32>
    %101 = arith.addf %96, %100 : vector<16x34xf32>
    %c12 = arith.constant 12 : index
    %102 = memref.load %arg1[%c12] : memref<14xf32, #tpu.memory_space<smem>>
    %103 = vector.extract_strided_slice %91 {offsets = [0, 2], sizes = [16, 34], strides = [1, 1]} : vector<16x36xf32> to vector<16x34xf32>
    %104 = vector.broadcast %102 : f32 to vector<16x34xf32>
    %105 = arith.mulf %104, %103 : vector<16x34xf32>
    %106 = arith.addf %101, %105 : vector<16x34xf32>
    %cst_24 = arith.constant 0.000000e+00 : f32
    %107 = vector.broadcast %cst_24 : f32 to vector<16x34xf32>
    %108 = arith.maximumf %106, %107 : vector<16x34xf32>
    %cst_25 = arith.constant 0.000000e+00 : f32
    %109 = vector.broadcast %cst_25 : f32 to vector<16x34xf32>
    %110 = arith.select %31, %108, %109 : vector<16x34xi1>, vector<16x34xf32>
    %c2_26 = arith.constant 2 : index
    %c1_27 = arith.constant 1 : index
    %111 = vector.load %arg4[%c2_26, %c1_27] : memref<18x36xf32, #tpu.memory_space<vmem>>, vector<16x34xf32>
    tpu.vector_store %arg4[%c2_26, %c1_27], %110 {strides = array<i32>} : memref<18x36xf32, #tpu.memory_space<vmem>>, vector<16x34xf32>,
    %c2_28 = arith.constant 2 : index
    %c1_29 = arith.constant 1 : index
    %112 = vector.load %arg4[%c2_28, %c1_29] : memref<18x36xf32, #tpu.memory_space<vmem>>, vector<16x16xf32>
    %c0_30 = arith.constant 0 : index
    %c0_31 = arith.constant 0 : index
    %c0_32 = arith.constant 0 : index
    %113 = vector.load %arg3[%c0_30, %c0_31, %c0_32] : memref<2x16x16xf32, #tpu.memory_space<vmem>>, vector<1x16x16xf32>
    %114 = vector.shape_cast %113 : vector<1x16x16xf32> to vector<16x16xf32>
    %115 = vector.shape_cast %112 : vector<16x16xf32> to vector<1x16x16xf32>
    tpu.vector_store %arg3[%c0_30, %c0_31, %c0_32], %115 {strides = array<i32>} : memref<2x16x16xf32, #tpu.memory_space<vmem>>, vector<1x16x16xf32>,
    %c2_33 = arith.constant 2 : index
    %c19_34 = arith.constant 19 : index
    %116 = vector.load %arg4[%c2_33, %c19_34] : memref<18x36xf32, #tpu.memory_space<vmem>>, vector<16x16xf32>
    %c1_35 = arith.constant 1 : index
    %c0_36 = arith.constant 0 : index
    %c0_37 = arith.constant 0 : index
    %117 = vector.load %arg3[%c1_35, %c0_36, %c0_37] : memref<2x16x16xf32, #tpu.memory_space<vmem>>, vector<1x16x16xf32>
    %118 = vector.shape_cast %117 : vector<1x16x16xf32> to vector<16x16xf32>
    %119 = vector.shape_cast %116 : vector<16x16xf32> to vector<1x16x16xf32>
    tpu.vector_store %arg3[%c1_35, %c0_36, %c0_37], %119 {strides = array<i32>} : memref<2x16x16xf32, #tpu.memory_space<vmem>>, vector<1x16x16xf32>,
    return
  }
  func.func @transform_0(%arg0: i32) -> i32 {
    %c0_i32 = arith.constant 0 : i32
    %c0_i32_0 = arith.constant 0 : i32
    return %c0_i32 : i32
  }
  func.func @transform_1(%arg0: i32) -> (i32, i32, i32) {
    %c0_i32 = arith.constant 0 : i32
    %c0_i32_0 = arith.constant 0 : i32
    %c0_i32_1 = arith.constant 0 : i32
    return %arg0, %c0_i32, %c0_i32_0 : i32, i32, i32
  }
  func.func @transform_2(%arg0: i32) -> (i32, i32, i32) {
    %c0_i32 = arith.constant 0 : i32
    %c0_i32_0 = arith.constant 0 : i32
    %c0_i32_1 = arith.constant 0 : i32
    return %arg0, %c0_i32, %c0_i32_0 : i32, i32, i32
  }
}

</mosaic_0001>

<bundles_post_ra>
// kernel: tpu_custom_call.1
= control target key start
LH: loop header
LB: loop body
LE: loop exit
PB: predicated region body
PF: predicated region fallthrough
CT: control target
= control target key end

     0   :  { %7 = vsyncpa [#allocation6], 0  ;;  %s627_s0 = inlined_call_operand.hbm [shape: f32[14], index: 0, kind: input, shape index: {}]   ;;  %s628_s1 = inlined_call_operand.hbm [shape: f32[2,16,16], index: 1, kind: input, shape index: {}]   ;;  %s629_s2 = inlined_call_operand.hbm [shape: f32[2,16,16], index: 2, kind: output, shape index: {}]  }
   0x1   :  { %8 = vsyncpa [#allocation4], 0 }
   0x2   :  { %9 = vsyncpa [#allocation5], 0  ;;  %s421_s11 = scalar_lea.hbm %s627_s0, 16 }
   0x3   :  { %p422_p0 = scmp.ne.s32.totalorder %s627_s0, %s421_s11  ;;  %p425_p1 = scmp.lt.u32.totalorder %s421_s11, %s627_s0 }
   0x5   :  { %p427_p2 = pnand %p425_p1, %p422_p0 }
   0x7   :  { %430 = shalt.err (!%p427_p2)
}
   0x8   :  { %s481_s16 = smov [#allocation3]   ;;  %s482_s19 = smov [#allocation7]  }
   0x9   :  { %17 = dma.hbm_to_smem %s627_s0, 16, %s481_s16, [#allocation6]  }
   0xa   :  { %s23_s20 = sshll.u32 %s482_s19, 4  ;;  %s431_s23 = scalar_lea.hbm %s628_s1, 512  ;;  %s24_s20 = int_to_ptr.vmem [resolvable:$true] %s23_s20 }
   0xb   :  { %p432_p3 = scmp.ne.s32.totalorder %s628_s1, %s431_s23  ;;  %p435_p4 = scmp.lt.u32.totalorder %s431_s23, %s628_s1 }
   0xd   :  { %p437_p5 = pnand %p435_p4, %p432_p3 }
   0xf   :  { %440 = shalt.err (!%p437_p5)
}
  0x10   :  { %s441_s28 = scalar_lea.vmem %s24_s20, 512  ;;  %p446_p7 = scmp.lt.s32.totalorder %s24_s20, %s24_s20 }
  0x11   :  { %p442_p6 = scmp.ne.s32.totalorder %s24_s20, %s441_s28  ;;  %p447_p8 = scmp.lt.s32.totalorder %s441_s28, %s441_s28 }
  0x13   :  { %p448_p9 = por %p447_p8, %p446_p7 }
  0x15   :  { %p449_p10 = pnand %p448_p9, %p442_p6 }
  0x17   :  { %452 = shalt.err (!%p449_p10)
}
  0x18   :  { %s483_s0 = smov 128   ;;  %s484_s29 = smov 8  }
  0x19   :  { %29 = dma.hbm_to_vmem [thread:$0]  %s628_s1, 512, %s24_s20, [#allocation4], %s483_s0, %s483_s0, %s484_s29  }
  0x1a   :  { %475 = dma.done.wait [#allocation6], 16  }
  0x1b   :  { %476 = vsyncadd [#allocation6], 4294967280 }
  0x1c   :  { %477 = dma.done.wait [#allocation4], 512  }
  0x1d   :  { %478 = vsyncadd [#allocation4], 4294966784 }
  0x1e   :  { %36 = sfence }
  0x1f   :  { %v42_v0 = vld [vmem:[#allocation7] sm:$0xff]  ;;  %v56_v1 = vld [vmem:[#allocation7 + $0x10] sm:$0xff]  ;;  %s485_s4 = smov 1   ;;  %s486_s5 = smov 19   ;;  %vm37_vm0 = vcmask 293888   ;;  %vm40_vm1 = vcmask 287744   ;;  %v69_v38 = vlaneseq }
  0x20   :  { %46 = vrot.lane.b32.xlu0 %v42_v0, %s485_s4  ;;  %60 = vrot.lane.b32.xlu1 %v56_v1, %s486_s5  ;;  %v43_v2 = vld [vmem:[#allocation7 + $0x8] sm:$0xff]  ;;  %v57_v3 = vld [vmem:[#allocation7 + $0x18] sm:$0xff]  ;;  %v487_v4 = vmov 0.0   ;;  %vm52_vm2 = vcmask 138248   ;;  %vm66_vm3 = vcmask 285848   ;;  %s396_s1 = sld [smem:[#allocation3 + $0x1]] }
  0x21   :  { %38 = vst.msk [vmem:[#allocation2] sm:$0xff] %vm37_vm0, %v487_v4  ;;  %39 = vst.msk [vmem:[#allocation2 + $0x8] sm:$0xff] %vm37_vm0, %v487_v4  ;;  %s397_s6 = sld [smem:[#allocation3 + $0x2]]  ;;  %s399_s7 = sld [smem:[#allocation3 + $0x4]]  ;;  %vm152_vm4 = vcmask 1046528   ;;  %v70_v39 = vand.u32 127, %v69_v38 }
  0x22   :  { %41 = vst.msk [vmem:[#allocation2 + $0x10] sm:$0x3] %vm40_vm1, %v487_v4  ;;  %s400_s8 = sld [smem:[#allocation3 + $0x5]]  ;;  %s488_s9 = smov 127   ;;  %vm232_vm11 = vcmask 285705   ;;  %vm234_vm12 = vcmask 285704  }
  0x23   :  { %s489_s10 = smov 126   ;;  %v71_v40 = vadd.s32 1, %v70_v39  ;;  %s96_s11 = sld [smem:[#allocation3]]  ;;  %vm236_vm13 = vcmask 278536   ;;  %vm285_vm14 = vcmask 1045504   ;;  %vm361_vm15 = vcmask 130048  }
  0x24   :  { %48 = vrot.lane.b32.xlu0 %v43_v2, %s485_s4  ;;  %62 = vrot.lane.b32.xlu1 %v57_v3, %s486_s5  ;;  %s395_s12 = sld [smem:[#allocation3 + $0x6]]  ;;  %s398_s13 = sld [smem:[#allocation3 + $0x3]] }
  0x25   :  { %v564_v41 = vmul.u32.u64.low 3817748708, %v71_v40  ;;  %v565_v42 = vmul.u32.u64.high 3817748708, %v71_v40, %v564_v41  ;;  %s403_s14 = sld [smem:[#allocation3 + $0x8]]  ;;  %s406_s15 = sld [smem:[#allocation3 + $0xb]] }
  0x26   :  { %v105_v9 = vstv %s396_s1  ;;  %s404_s16 = sld [smem:[#allocation3 + $0x9]]  ;;  %s407_s17 = sld [smem:[#allocation3 + $0xc]] }
  0x27   :  { %v125_v12 = vstv %s397_s6  ;;  %v165_v16 = vstv %s399_s7  ;;  %v78_v43 = vshrl.u32 %v565_v42, 4  ;;  %s402_s18 = sld [smem:[#allocation3 + $0x7]]  ;;  %s405_s19 = sld [smem:[#allocation3 + $0xa]] }
  0x28   :  { %v190_v22 = vstv %s400_s8  ;;  %s401_s20 = sld [smem:[#allocation3 + $0xd]]  ;;  %s490_s21 = smov 109  }
  0x29   :  { %v97_v44 = vstv %s96_s11  ;;  %v79_v45 = vmul.u32 18, %v78_v43  ;;  %s491_s22 = smov [#allocation8]  }
  0x2a   :  { %v95_v48 = vstv %s395_s12  ;;  %v145_v50 = vstv %s398_s13  ;;  %s382_s23 = sshll.u32 %s491_s22, 4  ;;  %s383_s23 = int_to_ptr.vmem [resolvable:$true] %s382_s23 }
  0x2b   :  { %v80_v49 = vsub.s32 %v71_v40, %v79_v45  ;;  %v296_v40 = vstv %s406_s15  ;;  %s453_s24 = scalar_lea.vmem %s383_s23, 512  ;;  %p458_p12 = scmp.lt.s32.totalorder %s383_s23, %s383_s23 }
  0x2c   :  { %v264_v42 = vstv %s404_s16  ;;  %p454_p11 = scmp.ne.s32.totalorder %s383_s23, %s453_s24  ;;  %p459_p13 = scmp.lt.s32.totalorder %s453_s24, %s453_s24 }
  0x2d   :  { %vm83_vm5 = vcmp.ne.s32.totalorder %v80_v49, 0  ;;  %vm84_vm6 = vcmp.lt.s32.totalorder %v80_v49, 0  ;;  %v86_v62 = vadd.s32 18, %v80_v49 }
  0x2e   :  { %vm85_vm7 = vmand %vm84_vm6, %vm83_vm5  ;;  %p460_p0 = por %p459_p13, %p458_p12 }
  0x30   :  { %p461_p1 = pnand %p460_p0, %p454_p11 }
  0x92   :  { %v47_v5 = vpop.permute.xlu0 %46  ;;  %v61_v6 = vpop.permute.xlu1 %60 }
  0x93   :  { %53 = vst.msk [vmem:[#allocation2 + $0x2] sm:$0xff] %vm52_vm2, %v47_v5 }
  0x94   :  { %67 = vst.msk [vmem:[#allocation2 + $0x2] sm:$0xff] %vm66_vm3, %v61_v6 }
  0x96   :  { %v49_v7 = vpop.permute.xlu0 %48  ;;  %v63_v8 = vpop.permute.xlu1 %62 }
  0x97   :  { %54 = vst.msk [vmem:[#allocation2 + $0xa] sm:$0xff] %vm52_vm2, %v49_v7 }
  0x98   :  { %68 = vst.msk [vmem:[#allocation2 + $0xa] sm:$0xff] %vm66_vm3, %v63_v8  ;;  %v87_v8 = vsel %vm85_vm7, %v86_v62, %v80_v49 }
  0x99   :  { %vm88_vm8 = vcmp.ge.s32.totalorder %v87_v8, 1  ;;  %vm89_vm9 = vcmp.le.s32.totalorder %v87_v8, 16 }
  0x9a   :  { %vm574_vm10 = vmand %vm88_vm8, %vm89_vm9 }
  0x9b   :  { %v536_v10 = vld [vmem:[#allocation2] sm:$0xff] }
  0x9c   :  { %v106_v11 = vmul.f32 %v105_v9, %v536_v10  ;;  %v126_v15 = vmul.f32 %v125_v12, %v536_v10  ;;  %v166_v19 = vmul.f32 %v165_v16, %v536_v10  ;;  %v191_v27 = vmul.f32 %v190_v22, %v536_v10 }
  0x9d   :  { %v98_v47 = vmul.f32 %v97_v44, %v536_v10  ;;  %v146_v56 = vmul.f32 %v145_v50, %v536_v10 }
  0x9e   :  { %112 = vrot.lane.b32.xlu0 %v106_v11, %s488_s9  ;;  %v172_v26 = vrot.slane %v166_v19, 1  ;;  %v197_v33 = vrot.slane %v191_v27, 1 }
  0x9f   :  { %v92_v13 = vld [vmem:[#allocation2 + $0x8] sm:$0xff]  ;;  %v541_v17 = vld [vmem:[#allocation2 + $0x10] sm:$0x3]  ;;  %v101_v54 = vadd.f32 %v98_v47, %v95_v48  ;;  %v153_v2 = vrot.slane %v146_v56, 1 }
  0xa0   :  { %v107_v14 = vmul.f32 %v105_v9, %v92_v13  ;;  %v167_v18 = vmul.f32 %v165_v16, %v92_v13  ;;  %v127_v20 = vmul.f32 %v125_v12, %v92_v13  ;;  %v108_v21 = vmul.f32 %v105_v9, %v541_v17 }
  0xa1   :  { %v168_v24 = vmul.f32 %v165_v16, %v541_v17  ;;  %v192_v25 = vmul.f32 %v190_v22, %v92_v13  ;;  %v128_v28 = vmul.f32 %v125_v12, %v541_v17  ;;  %v193_v32 = vmul.f32 %v190_v22, %v541_v17 }
  0xa2   :  { %114 = vrot.lane.b32.xlu1 %v107_v14, %s488_s9  ;;  %132 = vrot.lane.b32.xlu0 %v126_v15, %s489_s10  ;;  %v173_v23 = vrot.slane %v167_v18, 1  ;;  %v147_v53 = vmul.f32 %v145_v50, %v92_v13  ;;  %v99_v55 = vmul.f32 %v97_v44, %v92_v13  ;;  %v148_v61 = vmul.f32 %v145_v50, %v541_v17 }
  0xa3   :  { %v175_v30 = vrot.slane %v168_v24, 1  ;;  %v198_v31 = vrot.slane %v192_v25, 1  ;;  %v200_v36 = vrot.slane %v193_v32, 1  ;;  %v100_v1 = vmul.f32 %v97_v44, %v541_v17 }
  0xa4   :  { %v174_v29 = vsel %vm152_vm4, %v172_v26, %v173_v23  ;;  %v154_v60 = vrot.slane %v147_v53, 1  ;;  %v102_v63 = vadd.f32 %v99_v55, %v95_v48  ;;  %v156_v7 = vrot.slane %v148_v61, 1 }
  0xa5   :  { %v176_v34 = vsel %vm152_vm4, %v173_v23, %v175_v30  ;;  %v199_v35 = vsel %vm152_vm4, %v197_v33, %v198_v31  ;;  %v201_v37 = vsel %vm152_vm4, %v198_v31, %v200_v36  ;;  %v103_v10 = vadd.f32 %v100_v1, %v95_v48 }
  0xa6   :  { %134 = vrot.lane.b32.xlu1 %v127_v20, %s489_s10  ;;  %116 = vrot.lane.b32.xlu0 %v108_v21, %s488_s9  ;;  %v155_v5 = vsel %vm152_vm4, %v153_v2, %v154_v60  ;;  %v157_v14 = vsel %vm152_vm4, %v154_v60, %v156_v7  ;;  %v317_v48 = vstv %s407_s17  ;;  %v244_v1 = vstv %s402_s18 }
  0xaa   :  { %136 = vrot.lane.b32.xlu1 %v128_v28, %s489_s10  ;;  %177 = vrot.lane.b32.xlu0 %v174_v29, %s488_s9 }
  0xae   :  { %179 = vrot.lane.b32.xlu1 %v176_v34, %s488_s9  ;;  %202 = vrot.lane.b32.xlu0 %v199_v35, %s489_s10 }
  0xb2   :  { %204 = vrot.lane.b32.xlu1 %v201_v37, %s489_s10  ;;  %181 = vrot.lane.b32.xlu0 %v175_v30, %s488_s9  ;;  %v250_v37 = vstv %s403_s14 }
  0xb6   :  { %206 = vrot.lane.b32.xlu1 %v200_v36, %s489_s10 }
 0x110   :  { %v113_v46 = vpop.permute.xlu0 %112 }
 0x111   :  { %v121_v57 = vadd.f32 %v113_v46, %v101_v54 }
 0x114   :  { %v115_v51 = vpop.permute.xlu1 %114  ;;  %v133_v52 = vpop.permute.xlu0 %132 }
 0x115   :  { %v141_v0 = vadd.f32 %v133_v52, %v121_v57  ;;  %v122_v3 = vadd.f32 %v115_v51, %v102_v63 }
 0x117   :  { %v161_v11 = vadd.f32 %v155_v5, %v141_v0 }
 0x118   :  { %v135_v58 = vpop.permute.xlu1 %134  ;;  %v117_v59 = vpop.permute.xlu0 %116 }
 0x119   :  { %v142_v9 = vadd.f32 %v135_v58, %v122_v3  ;;  %v123_v12 = vadd.f32 %v117_v59, %v103_v10  ;;  %v278_v3 = vstv %s405_s19 }
 0x11b   :  { %v162_v18 = vadd.f32 %v157_v14, %v142_v9 }
 0x11c   :  { %v137_v4 = vpop.permute.xlu1 %136  ;;  %v178_v6 = vpop.permute.xlu0 %177 }
 0x11d   :  { %v186_v13 = vadd.f32 %v178_v6, %v161_v11  ;;  %v143_v17 = vadd.f32 %v137_v4, %v123_v12  ;;  %v242_v4 = vstv %s401_s20 }
 0x11f   :  { %v163_v26 = vadd.f32 %v156_v7, %v143_v17 }
 0x120   :  { %v180_v15 = vpop.permute.xlu1 %179  ;;  %v203_v16 = vpop.permute.xlu0 %202 }
 0x121   :  { %v211_v19 = vadd.f32 %v203_v16, %v186_v13  ;;  %v187_v21 = vadd.f32 %v180_v15, %v162_v18 }
 0x123   :  { %v214_v22 = vmax.f32 %v211_v19, 0.0 }
 0x124   :  { %v205_v23 = vpop.permute.xlu1 %204  ;;  %v182_v24 = vpop.permute.xlu0 %181 }
 0x125   :  { %v212_v25 = vadd.f32 %v205_v23, %v187_v21  ;;  %v217_v27 = vsel %vm574_vm10, %v214_v22, 0.0  ;;  %v188_v29 = vadd.f32 %v182_v24, %v163_v26 }
 0x126   :  { %223 = vrot.lane.b32.xlu0 %v217_v27, %s485_s4 }
 0x127   :  { %v215_v28 = vmax.f32 %v212_v25, 0.0 }
 0x128   :  { %v207_v30 = vpop.permute.xlu1 %206 }
 0x129   :  { %v213_v31 = vadd.f32 %v207_v30, %v188_v29  ;;  %v218_v32 = vsel %vm574_vm10, %v215_v28, 0.0 }
 0x12a   :  { %225 = vrot.lane.b32.xlu1 %v218_v32, %s485_s4 }
 0x12b   :  { %v216_v33 = vmax.f32 %v213_v31, 0.0 }
 0x12d   :  { %v219_v34 = vsel %vm574_vm10, %v216_v33, 0.0 }
 0x12e   :  { %227 = vrot.lane.b32.xlu0 %v219_v34, %s485_s4 }
 0x198   :  { %v224_v35 = vpop.permute.xlu0 %223 }
 0x199   :  { %233 = vst.msk [vmem:[#allocation2 + $0x1] sm:$0xfe] %vm232_vm11, %v224_v35 }
 0x19c   :  { %v226_v36 = vpop.permute.xlu1 %225 }
 0x19d   :  { %235 = vst.msk [vmem:[#allocation2 + $0x9] sm:$0xff] %vm234_vm12, %v226_v36 }
 0x1a0   :  { %v228_v38 = vpop.permute.xlu0 %227  ;;  %v238_v39 = vld [vmem:[#allocation2] sm:$0xff] }
 0x1a1   :  { %237 = vst.msk [vmem:[#allocation2 + $0x11] sm:$0x1] %vm236_vm13, %v228_v38  ;;  %v251_v41 = vmul.f32 %v250_v37, %v238_v39  ;;  %v297_v43 = vmul.f32 %v296_v40, %v238_v39  ;;  %v265_v46 = vmul.f32 %v264_v42, %v238_v39  ;;  %v318_v52 = vmul.f32 %v317_v48, %v238_v39 }
 0x1a2   :  { %v245_v2 = vmul.f32 %v244_v1, %v238_v39  ;;  %v279_v7 = vmul.f32 %v278_v3, %v238_v39 }
 0x1a3   :  { %255 = vrot.lane.b32.xlu1 %v251_v41, %s488_s9  ;;  %v303_v50 = vrot.slane %v297_v43, 2  ;;  %v324_v60 = vrot.slane %v318_v52, 2 }
 0x1a4   :  { %v239_v44 = vld [vmem:[#allocation2 + $0x8] sm:$0xff]  ;;  %v247_v8 = vadd.f32 %v245_v2, %v242_v4  ;;  %v286_v15 = vrot.slane %v279_v7, 2 }
 0x1a5   :  { %v252_v45 = vmul.f32 %v250_v37, %v239_v44  ;;  %v298_v47 = vmul.f32 %v296_v40, %v239_v44  ;;  %v319_v49 = vmul.f32 %v317_v48, %v239_v44  ;;  %v266_v54 = vmul.f32 %v264_v42, %v239_v44 }
 0x1a6   :  { %v280_v5 = vmul.f32 %v278_v3, %v239_v44  ;;  %v246_v9 = vmul.f32 %v244_v1, %v239_v44 }
 0x1a7   :  { %257 = vrot.lane.b32.xlu0 %v252_v45, %s488_s9  ;;  %269 = vrot.lane.b32.xlu1 %v265_v46, %s489_s10  ;;  %v304_v51 = vrot.slane %v298_v47, 2  ;;  %v325_v57 = vrot.slane %v319_v49, 2 }
 0x1a8   :  { %v240_v53 = vld [vmem:[#allocation2 + $0x10] sm:$0x3]  ;;  %v287_v10 = vrot.slane %v280_v5, 2  ;;  %v248_v17 = vadd.f32 %v246_v9, %v242_v4 }
 0x1a9   :  { %v305_v55 = vsel %vm285_vm14, %v303_v50, %v304_v51  ;;  %v299_v56 = vmul.f32 %v296_v40, %v240_v53  ;;  %v320_v58 = vmul.f32 %v317_v48, %v240_v53  ;;  %v326_v62 = vsel %vm285_vm14, %v324_v60, %v325_v57 }
 0x1aa   :  { %v281_v11 = vmul.f32 %v278_v3, %v240_v53  ;;  %v288_v18 = vsel %vm285_vm14, %v286_v15, %v287_v10 }
 0x1ab   :  { %271 = vrot.lane.b32.xlu0 %v266_v54, %s489_s10  ;;  %308 = vrot.lane.b32.xlu1 %v305_v55, %s488_s9  ;;  %v306_v59 = vrot.slane %v299_v56, 2  ;;  %v327_v63 = vrot.slane %v320_v58, 2 }
 0x1ac   :  { %v289_v19 = vrot.slane %v281_v11, 2 }
 0x1ad   :  { %v307_v61 = vsel %vm285_vm14, %v304_v51, %v306_v59  ;;  %v328_v0 = vsel %vm285_vm14, %v325_v57, %v327_v63 }
 0x1ae   :  { %v290_v26 = vsel %vm285_vm14, %v287_v10, %v289_v19 }
 0x1af   :  { %329 = vrot.lane.b32.xlu1 %v326_v62, %s489_s10  ;;  %310 = vrot.lane.b32.xlu0 %v307_v61, %s488_s9 }
 0x1b3   :  { %331 = vrot.lane.b32.xlu0 %v328_v0, %s489_s10 }
 0x215   :  { %v256_v6 = vpop.permute.xlu1 %255 }
 0x216   :  { %v261_v12 = vadd.f32 %v256_v6, %v247_v8 }
 0x219   :  { %v270_v13 = vpop.permute.xlu1 %269  ;;  %v258_v14 = vpop.permute.xlu0 %257 }
 0x21a   :  { %v275_v16 = vadd.f32 %v270_v13, %v261_v12  ;;  %v262_v21 = vadd.f32 %v258_v14, %v248_v17 }
 0x21c   :  { %v293_v22 = vadd.f32 %v288_v18, %v275_v16 }
 0x21d   :  { %v309_v23 = vpop.permute.xlu1 %308  ;;  %v272_v24 = vpop.permute.xlu0 %271 }
 0x21e   :  { %v276_v25 = vadd.f32 %v272_v24, %v262_v21  ;;  %v314_v27 = vadd.f32 %v309_v23, %v293_v22 }
 0x220   :  { %v294_v28 = vadd.f32 %v290_v26, %v276_v25 }
 0x221   :  { %v330_v29 = vpop.permute.xlu1 %329  ;;  %v311_v30 = vpop.permute.xlu0 %310 }
 0x222   :  { %v335_v31 = vadd.f32 %v330_v29, %v314_v27  ;;  %v315_v33 = vadd.f32 %v311_v30, %v294_v28 }
 0x224   :  { %v337_v32 = vmax.f32 %v335_v31, 0.0 }
 0x225   :  { %v332_v34 = vpop.permute.xlu0 %331 }
 0x226   :  { %v336_v35 = vadd.f32 %v332_v34, %v315_v33  ;;  %v339_v36 = vsel %vm574_vm10, %v337_v32, 0.0 }
 0x227   :  { %343 = vrot.lane.b32.xlu1 %v339_v36, %s485_s4 }
 0x228   :  { %v338_v37 = vmax.f32 %v336_v35, 0.0 }
 0x22a   :  { %v340_v38 = vsel %vm574_vm10, %v338_v37, 0.0 }
 0x22b   :  { %345 = vrot.lane.b32.xlu0 %v340_v38, %s485_s4 }
 0x299   :  { %v344_v39 = vpop.permute.xlu1 %343 }
 0x29a   :  { %349 = vst.msk [vmem:[#allocation2 + $0x2] sm:$0xff] %vm234_vm12, %v344_v39 }
 0x29d   :  { %v346_v40 = vpop.permute.xlu0 %345 }
 0x29e   :  { %350 = vst.msk [vmem:[#allocation2 + $0xa] sm:$0xff] %vm234_vm12, %v346_v40 }
 0x2a1   :  { %v351_v41 = vld [vmem:[#allocation2 + $0x2] sm:$0xff] }
 0x2a2   :  { %355 = vrot.lane.b32.xlu1 %v351_v41, %s488_s9 }
 0x2a5   :  { %v352_v42 = vld [vmem:[#allocation2 + $0xa] sm:$0xff] }
 0x2a6   :  { %368 = vrot.lane.b32.xlu1 %v351_v41, %s490_s21  ;;  %357 = vrot.lane.b32.xlu0 %v352_v42, %s488_s9 }
 0x2aa   :  { %370 = vrot.lane.b32.xlu0 %v352_v42, %s490_s21 }
 0x314   :  { %v356_v20 = vpop.permute.xlu1 %355 }
 0x315   :  { %362 = vst.msk [vmem:[#allocation8] sm:$0xff] %vm361_vm15, %v356_v20 }
 0x318   :  { %v369_v43 = vpop.permute.xlu1 %368  ;;  %v358_v44 = vpop.permute.xlu0 %357 }
 0x319   :  { %375 = vst.msk [vmem:[#allocation8 + $0x10] sm:$0xff] %vm361_vm15, %v369_v43  ;;  %363 = vst.msk [vmem:[#allocation8 + $0x8] sm:$0xff] %vm361_vm15, %v358_v44 }
 0x31c   :  { %v371_v45 = vpop.permute.xlu0 %370 }
 0x31d   :  { %376 = vst.msk [vmem:[#allocation8 + $0x18] sm:$0xff] %vm361_vm15, %v371_v45 }
 0x31e   :  { %464 = shalt.err (!%p461_p1)
}
 0x31f   :  { %s465_s27 = scalar_lea.hbm %s629_s2, 512 }
 0x320   :  { %p466_p2 = scmp.ne.s32.totalorder %s629_s2, %s465_s27  ;;  %p469_p3 = scmp.lt.u32.totalorder %s465_s27, %s629_s2 }
 0x322   :  { %p471_p4 = pnand %p469_p3, %p466_p2 }
 0x324   :  { %474 = shalt.err (!%p471_p4)
}
 0x325   :  { %388 = dma.vmem_to_hbm [thread:$0]  %s383_s23, 512, %s629_s2, [#allocation5], %s483_s0, %s483_s0, %s484_s29  }
 0x326   :  { %479 = dma.done.wait [#allocation5], 512  }
 0x327   :  { %480 = vsyncadd [#allocation5], 4294966784 }
 0x328   :  { %392 = vsyncpa [#allocation4], 1 }
 0x329   :  { %393 = vsyncpa [#allocation5], 1 }
 0x32a   :  { %394 = vsyncpa [#allocation6], 1 }

</bundles_post_ra>
